<compile_context>
chip_gen: v7x
topology: tpu7x:2x2x1
jax: 0.10.0
libtpu: 0.0.40
codegen_flags: <defaults>
</compile_context>

<pallas_src>
from functools import partial

import jax
import jax.numpy as jnp
from jax.experimental import pallas as pl
from jax.experimental.pallas import tpu as pltpu


# ----------------------------- Pallas kernel -------------------------------
def _pinn_mlp_kernel(x_ref, w1_ref, b1_ref, w2_ref, b2_ref, w3_ref, b3_ref,
                     o_ref):
    # Batch-on-lanes layout:
    #   x_ref : (d_in,  tile_n)      one batch tile, batch on lanes
    #   w1_ref: (h, d_in)   b1_ref: (h, 1)
    #   w2_ref: (h, h)      b2_ref: (h, 1)
    #   w3_ref: (h, d_out)  b3_ref: (d_out, 1)
    #   o_ref : (d_out, tile_n)      lane-dense output tile (unmasked vst)
    x = x_ref[...]
    w1 = w1_ref[...]
    d_in = x.shape[0]
    d_out = o_ref.shape[0]

    # Layer 1: K == d_in (tiny, 2) -> VPU outer-product FMAs, skip the MXU.
    h = b1_ref[...]                                  # (h, 1) -> broadcasts
    for k in range(d_in):                            # static unroll
        h = h + w1[:, k:k + 1] * x[k:k + 1, :]       # (h,1)*(1,tile_n)
    h = jnp.tanh(h)                                  # (h, tile_n)

    # Layer 2: real MXU matmul, lane-dense N = tile_n.
    h = jnp.tanh(
        jnp.dot(w2_ref[...], h, preferred_element_type=jnp.float32)
        + b2_ref[...])

    # Layer 3: M == d_out (1) -> VPU multiply + sublane (XLU) reduction
    # instead of an M=1 MXU matmul.
    w3 = w3_ref[...]                                 # (h, d_out)
    if d_out == 1:
        o = jnp.sum(w3 * h, axis=0, keepdims=True)   # (1, tile_n)
    else:
        o = jax.lax.dot_general(                     # (d_out, tile_n)
            w3, h, (((0,), (0,)), ((), ())),
            preferred_element_type=jnp.float32)
    o_ref[...] = o + b3_ref[...]


# ------------------------------ wrapper -------------------------------------
@partial(jax.jit, static_argnames=("tile_n",))
def decay_pinn_forward(x, params, *, tile_n=8192):
    """Forward of decay_pinn: returns base_model(x) with shape (N, d_out).

    `params['decay']` mirrors the nn.Parameter of the PyTorch module; it is
    intentionally unused in the forward pass (matching the reference).
    """
    w1, b1, w2, b2, w3, b3 = (params["w1"], params["b1"], params["w2"],
                              params["b2"], params["w3"], params["b3"])
    n, d_in = x.shape
    h = w1.shape[1]
    d_out = w3.shape[1]

    # --- tile selection --------------------------------------------------
    # Big tiles amortize the ~0.35 us per-grid-step overhead, but keep the
    # grid >= 2 so both v7x TensorCores get work when N allows it.
    n_128 = pl.cdiv(n, 128) * 128
    half = pl.cdiv(pl.cdiv(n_128, 2), 128) * 128
    tile = max(128, min(tile_n, half))
    n_pad = pl.cdiv(n, tile) * tile
    grid = (n_pad // tile,)

    # --- layout plumbing (fused under jit) --------------------------------
    # Batch-on-lanes: x -> (d_in, n_pad); weights transposed; biases (·, 1).
    xt = jnp.pad(x.astype(jnp.float32).T, ((0, 0), (0, n_pad - n)))
    w1t, b1c = w1.T, b1.reshape(h, 1)
    w2t, b2c = w2.T, b2.reshape(h, 1)
    w3n, b3c = w3, b3.reshape(d_out, 1)              # w3 kept (h, d_out)

    full = lambda shape: pl.BlockSpec(shape, lambda i: (0, 0))

    cost = pl.CostEstimate(
        flops=2 * n_pad * (d_in * h + h * h + h * d_out),
        transcendentals=2 * n_pad * h,
        bytes_accessed=4 * (n_pad * (d_in + d_out)
                            + d_in * h + h * h + h * d_out + 2 * h + d_out),
    )

    out_t = pl.pallas_call(
        _pinn_mlp_kernel,
        out_shape=jax.ShapeDtypeStruct((d_out, n_pad), jnp.float32),
        grid_spec=pltpu.PrefetchScalarGridSpec(
            num_scalar_prefetch=0,
            grid=grid,
            in_specs=[
                pl.BlockSpec((d_in, tile), lambda i: (0, i)),     # x tile
                full((h, d_in)),                                  # w1^T
                full((h, 1)),                                     # b1
                full((h, h)),                                     # w2^T
                full((h, 1)),                                     # b2
                full((h, d_out)),                                 # w3
                full((d_out, 1)),                                 # b3
            ],
            out_specs=pl.BlockSpec((d_out, tile), lambda i: (0, i)),
        ),
        compiler_params=pltpu.CompilerParams(
            dimension_semantics=("parallel",)),
        cost_estimate=cost,
    )(xt, w1t, b1c, w2t, b2c, w3n, b3c)

    # Slice off padding; return natural (N, d_out) layout to match PyTorch.
    # (Callers that only need the lane-dense (d_out, N) slab can skip this.)
    return out_t[:, :n].T


def init_params(key, d_in=2, hidden=32, d_out=1):
    k1, k2, k3 = jax.random.split(key, 3)
    scale = 0.1
    return {
        "w1": scale * jax.random.normal(k1, (d_in, hidden), jnp.float32),
        "b1": jnp.zeros((1, hidden), jnp.float32),
        "w2": scale * jax.random.normal(k2, (hidden, hidden), jnp.float32),
        "b2": jnp.zeros((1, hidden), jnp.float32),
        "w3": scale * jax.random.normal(k3, (hidden, d_out), jnp.float32),
        "b3": jnp.zeros((1, d_out), jnp.float32),
        # nn.Parameter(torch.tensor(0.0)) -- present in the module, unused in
        # the forward pass (kept for parity with the PyTorch module).
        "decay": jnp.float32(0.0),
    }


def _reference_forward(x, params):
    hp = jax.lax.Precision.HIGHEST
    h = jnp.tanh(jnp.dot(x, params["w1"], precision=hp) + params["b1"])
    h = jnp.tanh(jnp.dot(h, params["w2"], precision=hp) + params["b2"])
    return jnp.dot(h, params["w3"], precision=hp) + params["b3"]


if __name__ == "__main__":
    key = jax.random.PRNGKey(0)
    kx, kp = jax.random.split(key)

    # Ragged batch (not a multiple of the tile) to exercise the padding path.
    # With the grid>=2 heuristic this becomes 2 tiles of 1024 (n_pad = 2048).
    N, D_IN = 2000, 2          # (x, t) collocation points for a decay PINN
    x = jax.random.normal(kx, (N, D_IN), jnp.float32)
    params = init_params(kp, d_in=D_IN, hidden=32, d_out=1)

    out = decay_pinn_forward(x, params)
    out = jax.block_until_ready(out)

    ref = _reference_forward(x, params)
    assert out.shape == (N, 1)
    assert jnp.allclose(out, ref, atol=1e-5, rtol=1e-5), \
        float(jnp.max(jnp.abs(out - ref)))

    print("KERNEL_OK")
</pallas_src>

<mosaic_0001>
module attributes {stable_mosaic.version = 11 : i64} {
  func.func @_pinn_mlp_kernel(%arg0: i32, %arg1: memref<2x1024xf32, #tpu.memory_space<vmem>>, %arg2: memref<32x2xf32, #tpu.memory_space<vmem>>, %arg3: memref<32x1xf32, #tpu.memory_space<vmem>>, %arg4: memref<32x32xf32, #tpu.memory_space<vmem>>, %arg5: memref<32x1xf32, #tpu.memory_space<vmem>>, %arg6: memref<32x1xf32, #tpu.memory_space<vmem>>, %arg7: memref<1x1xf32, #tpu.memory_space<vmem>>, %arg8: memref<1x1024xf32, #tpu.memory_space<vmem>>) attributes {dimension_semantics = [#tpu.dimension_semantics<parallel>], iteration_bounds = array<i64: 2>, scalar_prefetch = 0 : i64, scratch_operands = 0 : i64, tpu.core_type = #tpu.core_type<tc>, window_params = [{transform_indices = @transform_0, window_bounds = array<i64: 2, 1024>}, {pipeline_mode = #tpu.pipeline_mode<synchronous>, transform_indices = @transform_1, window_bounds = array<i64: 32, 2>}, {pipeline_mode = #tpu.pipeline_mode<synchronous>, transform_indices = @transform_2, window_bounds = array<i64: 32, 1>}, {pipeline_mode = #tpu.pipeline_mode<synchronous>, transform_indices = @transform_3, window_bounds = array<i64: 32, 32>}, {pipeline_mode = #tpu.pipeline_mode<synchronous>, transform_indices = @transform_4, window_bounds = array<i64: 32, 1>}, {pipeline_mode = #tpu.pipeline_mode<synchronous>, transform_indices = @transform_5, window_bounds = array<i64: 32, 1>}, {pipeline_mode = #tpu.pipeline_mode<synchronous>, transform_indices = @transform_6, window_bounds = array<i64: 1, 1>}, {transform_indices = @transform_7, window_bounds = array<i64: 1, 1024>}]} {
    %c0 = arith.constant 0 : index
    %c0_0 = arith.constant 0 : index
    %0 = vector.load %arg1[%c0, %c0_0] : memref<2x1024xf32, #tpu.memory_space<vmem>>, vector<2x1024xf32>
    %c0_1 = arith.constant 0 : index
    %c0_2 = arith.constant 0 : index
    %1 = vector.load %arg2[%c0_1, %c0_2] : memref<32x2xf32, #tpu.memory_space<vmem>>, vector<32x2xf32>
    %c0_3 = arith.constant 0 : index
    %c0_4 = arith.constant 0 : index
    %2 = vector.load %arg3[%c0_3, %c0_4] : memref<32x1xf32, #tpu.memory_space<vmem>>, vector<32x1xf32>
    %3 = vector.extract_strided_slice %1 {offsets = [0, 0], sizes = [32, 1], strides = [1, 1]} : vector<32x2xf32> to vector<32x1xf32>
    %4 = vector.extract_strided_slice %0 {offsets = [0, 0], sizes = [1, 1024], strides = [1, 1]} : vector<2x1024xf32> to vector<1x1024xf32>
    %5 = vector.broadcast %3 : vector<32x1xf32> to vector<32x1024xf32>
    %6 = vector.broadcast %4 : vector<1x1024xf32> to vector<32x1024xf32>
    %7 = arith.mulf %5, %6 : vector<32x1024xf32>
    %8 = vector.broadcast %2 : vector<32x1xf32> to vector<32x1024xf32>
    %9 = arith.addf %8, %7 : vector<32x1024xf32>
    %10 = vector.extract_strided_slice %1 {offsets = [0, 1], sizes = [32, 1], strides = [1, 1]} : vector<32x2xf32> to vector<32x1xf32>
    %11 = vector.extract_strided_slice %0 {offsets = [1, 0], sizes = [1, 1024], strides = [1, 1]} : vector<2x1024xf32> to vector<1x1024xf32>
    %12 = vector.broadcast %10 : vector<32x1xf32> to vector<32x1024xf32>
    %13 = vector.broadcast %11 : vector<1x1024xf32> to vector<32x1024xf32>
    %14 = arith.mulf %12, %13 : vector<32x1024xf32>
    %15 = arith.addf %9, %14 : vector<32x1024xf32>
    %16 = math.tanh %15 : vector<32x1024xf32>
    %c0_5 = arith.constant 0 : index
    %c0_6 = arith.constant 0 : index
    %17 = vector.load %arg4[%c0_5, %c0_6] : memref<32x32xf32, #tpu.memory_space<vmem>>, vector<32x32xf32>
    %cst = arith.constant dense<0.000000e+00> : vector<32x1024xf32>
    %18 = tpu.matmul %17, %16, %cst {dimension_numbers = #tpu.dot_dimension_numbers<[1], [0], [0], [1], [0, 0, 1, 1], [], []>} : vector<32x32xf32>, vector<32x1024xf32>, vector<32x1024xf32> -> vector<32x1024xf32>
    %c0_7 = arith.constant 0 : index
    %c0_8 = arith.constant 0 : index
    %19 = vector.load %arg5[%c0_7, %c0_8] : memref<32x1xf32, #tpu.memory_space<vmem>>, vector<32x1xf32>
    %20 = vector.broadcast %19 : vector<32x1xf32> to vector<32x1024xf32>
    %21 = arith.addf %18, %20 : vector<32x1024xf32>
    %22 = math.tanh %21 : vector<32x1024xf32>
    %c0_9 = arith.constant 0 : index
    %c0_10 = arith.constant 0 : index
    %23 = vector.load %arg6[%c0_9, %c0_10] : memref<32x1xf32, #tpu.memory_space<vmem>>, vector<32x1xf32>
    %24 = vector.broadcast %23 : vector<32x1xf32> to vector<32x1024xf32>
    %25 = arith.mulf %24, %22 : vector<32x1024xf32>
    %cst_11 = arith.constant dense<0.000000e+00> : vector<1024xf32>
    %26 = vector.multi_reduction <add>, %25, %cst_11 [0] : vector<32x1024xf32> to vector<1024xf32>
    %27 = vector.shape_cast %26 : vector<1024xf32> to vector<1x1024xf32>
    %c0_12 = arith.constant 0 : index
    %c0_13 = arith.constant 0 : index
    %28 = vector.load %arg7[%c0_12, %c0_13] : memref<1x1xf32, #tpu.memory_space<vmem>>, vector<1x1xf32>
    %29 = vector.broadcast %28 : vector<1x1xf32> to vector<1x1024xf32>
    %30 = arith.addf %27, %29 : vector<1x1024xf32>
    %c0_14 = arith.constant 0 : index
    %c0_15 = arith.constant 0 : index
    %31 = vector.load %arg8[%c0_14, %c0_15] : memref<1x1024xf32, #tpu.memory_space<vmem>>, vector<1x1024xf32>
    tpu.vector_store %arg8[%c0_14, %c0_15], %30 {strides = array<i32>} : memref<1x1024xf32, #tpu.memory_space<vmem>>, vector<1x1024xf32>,
    return
  }
  func.func @transform_0(%arg0: i32) -> (i32, i32) {
    %c0_i32 = arith.constant 0 : i32
    %c0_i32_0 = arith.constant 0 : i32
    return %c0_i32, %arg0 : i32, i32
  }
  func.func @transform_1(%arg0: i32) -> (i32, i32) {
    %c0_i32 = arith.constant 0 : i32
    %c0_i32_0 = arith.constant 0 : i32
    %c0_i32_1 = arith.constant 0 : i32
    return %c0_i32, %c0_i32_0 : i32, i32
  }
  func.func @transform_2(%arg0: i32) -> (i32, i32) {
    %c0_i32 = arith.constant 0 : i32
    %c0_i32_0 = arith.constant 0 : i32
    %c0_i32_1 = arith.constant 0 : i32
    return %c0_i32, %c0_i32_0 : i32, i32
  }
  func.func @transform_3(%arg0: i32) -> (i32, i32) {
    %c0_i32 = arith.constant 0 : i32
    %c0_i32_0 = arith.constant 0 : i32
    %c0_i32_1 = arith.constant 0 : i32
    return %c0_i32, %c0_i32_0 : i32, i32
  }
  func.func @transform_4(%arg0: i32) -> (i32, i32) {
    %c0_i32 = arith.constant 0 : i32
    %c0_i32_0 = arith.constant 0 : i32
    %c0_i32_1 = arith.constant 0 : i32
    return %c0_i32, %c0_i32_0 : i32, i32
  }
  func.func @transform_5(%arg0: i32) -> (i32, i32) {
    %c0_i32 = arith.constant 0 : i32
    %c0_i32_0 = arith.constant 0 : i32
    %c0_i32_1 = arith.constant 0 : i32
    return %c0_i32, %c0_i32_0 : i32, i32
  }
  func.func @transform_6(%arg0: i32) -> (i32, i32) {
    %c0_i32 = arith.constant 0 : i32
    %c0_i32_0 = arith.constant 0 : i32
    %c0_i32_1 = arith.constant 0 : i32
    return %c0_i32, %c0_i32_0 : i32, i32
  }
  func.func @transform_7(%arg0: i32) -> (i32, i32) {
    %c0_i32 = arith.constant 0 : i32
    %c0_i32_0 = arith.constant 0 : i32
    return %c0_i32, %arg0 : i32, i32
  }
}

</mosaic_0001>

<bundles_post_ra>
// kernel: decay_pinn_forward.1
= control target key start
LH: loop header
LB: loop body
LE: loop exit
PB: predicated region body
PF: predicated region fallthrough
CT: control target
= control target key end

     0   :  { %s1599_s26 = smov 0   ;;  %s2042_s0 = inlined_call_operand.vmem [shape: f32[2,2048], index: 0, kind: input, shape index: {}]   ;;  %s2043_s1 = inlined_call_operand.vmem [shape: f32[32,2], index: 1, kind: input, shape index: {}]   ;;  %s2044_s2 = inlined_call_operand.vmem [shape: f32[32,1], index: 2, kind: input, shape index: {}]   ;;  %s2045_s3 = inlined_call_operand.vmem [shape: f32[32,32], index: 3, kind: input, shape index: {}]   ;;  %s2046_s4 = inlined_call_operand.vmem [shape: f32[32,1], index: 4, kind: input, shape index: {}]   ;;  %s2047_s5 = inlined_call_operand.vmem [shape: f32[32,1], index: 5, kind: input, shape index: {}]   ;;  %s2048_s6 = inlined_call_operand.<no memory space> [shape: f32[1,1], index: 6, kind: input, shape index: {}]   ;;  %s2049_s7 = inlined_call_operand.vmem [shape: f32[1,2048], index: 7, kind: output, shape index: {}]  }
   0x1   :  { %v12_v0 = vstv %s2048_s6 }
   0x2   :  { %13 = vst [vmem:[#allocation2] sm:$0x1] %v12_v0 }
   0x3 LB: > { %s1338_s27 = sadd.s32 4294967295, %s1550_s26   ;;  %p1342_p0 = scmp.ge.s32.totalorder %s1550_s26, 1  ;;  %s1550_s26 = sphi %s1599_s26, %s19_s26  }
   0x4   : > { %p240_p1 = scmp.lt.s32.totalorder %s1550_s26, 3 }
   0x6   : > { %p241_p2 = pnand %p1342_p0, %p240_p1 }
   0x7   : > { %v288_v1 = vld [vmem:[%s2044_s2] sm:$0xff] (!%p241_p2)  ;;  %v1552_v3 = vmov (!%p241_p2), 0   ;;  %v289_v4 = vld [vmem:[%s2044_s2 + $0x8] sm:$0xff] (!%p241_p2)  ;;  %v287_v6 = vld [vmem:[%s2043_s1 + $0x18] sm:$0xff] (!%p241_p2)  ;;  %v1553_v7 = vmov (!%p241_p2), 1   ;;  %v1554_v11 = vmov (!%p241_p2), 0.0   ;;  %v314_v21 = vlaneseq (!%p241_p2) }
   0x8   : > { %244 = sbr.rel (%p241_p2) target bundleno = 482 (0x1e2), region = 48  ;;  %v284_v2 = vld [vmem:[%s2043_s1] sm:$0xff] (!%p241_p2)  ;;  %1409 = vset.pattern.permute.xlu1 (!%p241_p2), %v1552_v3  ;;  %1408 = vset.pattern.permute.xlu0 (!%p241_p2), %v1552_v3  ;;  %v285_v5 = vld [vmem:[%s2043_s1 + $0x8] sm:$0xff] (!%p241_p2)  ;;  %v286_v8 = vld [vmem:[%s2043_s1 + $0x10] sm:$0xff] (!%p241_p2)  ;;  %s1343_s14 = sshll.u32 (!%p241_p2), %s1338_s27, 3  ;;  %vm682_vm0 = vcmask (!%p241_p2), 261120  }
   0x9   : > { %420 = vperm.xlu1 (!%p241_p2), %1409, %v288_v1   ;;  %294 = vperm.xlu0 (!%p241_p2), %1408, %v284_v2   ;;  %v290_v9 = vld [vmem:[%s2044_s2 + $0x10] sm:$0xff] (!%p241_p2)  ;;  %v291_v10 = vld [vmem:[%s2044_s2 + $0x18] sm:$0xff] (!%p241_p2)  ;;  %v658_v12 = vld [vmem:[%s2046_s4] sm:$0xff] (!%p241_p2)  ;;  %p272_p3 = scmp.lt.s32.totalorder (!%p241_p2), %s1343_s14, 15  ;;  %v1662_v22 = vshrl.u32 (!%p241_p2), %v314_v21, 7 }
   0xa   : > { %759 = vmatprep.mubr.f32.mxu0 (!%p241_p2), %v1554_v11  ;;  %848 = vmatprep.mubr.f32.mxu1 (!%p241_p2), %v1554_v11  ;;  %v659_v13 = vld [vmem:[%s2046_s4 + $0x8] sm:$0xff] (!%p241_p2)  ;;  %v660_v14 = vld [vmem:[%s2046_s4 + $0x10] sm:$0xff] (!%p241_p2)  ;;  %v1083_v15 = vld [vmem:[%s2047_s5] sm:$0xff] (!%p241_p2) }
   0xb   : > { %v661_v16 = vld [vmem:[%s2046_s4 + $0x18] sm:$0xff] (!%p241_p2)  ;;  %v1085_v17 = vld [vmem:[%s2047_s5 + $0x10] sm:$0xff] (!%p241_p2)  ;;  %v1084_v18 = vld [vmem:[%s2047_s5 + $0x8] sm:$0xff] (!%p241_p2)  ;;  %v320_v23 = vsub.s32 (!%p241_p2), 2, %v1662_v22  ;;  %v1669_v24 = vsub.s32 (!%p241_p2), 0, %v1662_v22  ;;  %v328_v26 = vsub.s32 (!%p241_p2), 6, %v1662_v22 }
   0xc   : > { %v1211_v19 = vld [vmem:[#allocation2] sm:$0x1] (!%p241_p2)  ;;  %v1086_v20 = vld [vmem:[%s2047_s5 + $0x18] sm:$0xff] (!%p241_p2)  ;;  %v324_v27 = vsub.s32 (!%p241_p2), 4, %v1662_v22  ;;  %v488_v29 = vsub.s32 (!%p241_p2), 1, %v1662_v22  ;;  %v496_v30 = vsub.s32 (!%p241_p2), 5, %v1662_v22 }
   0xd   : > { %425 = vperm.xlu1 (!%p241_p2), %1409, %v289_v4   ;;  %299 = vperm.xlu0 (!%p241_p2), %1408, %v285_v5   ;;  %v492_v33 = vsub.s32 (!%p241_p2), 3, %v1662_v22  ;;  %v500_v35 = vsub.s32 (!%p241_p2), 7, %v1662_v22 }
   0xf   : > { %s2051_s14 = smov (!%p272_p3, %s1343_s14), 15 }
  0x10   : > { %s1344_s15 = sshll.u32 %s2051_s14, 1  ;;  %s280_s6 = scalar_lea.vmem %s2049_s7, %s2051_s14 }
  0x11   : > { %1410 = vset.pattern.permute.xlu1 %v1553_v7  ;;  %309 = vperm.xlu0 %1408, %v287_v6   ;;  %s275_s18 = scalar_lea.vmem %s2042_s0, %s1344_s15 }
  0x12   : > { %475 = vperm.xlu1 %1410, %v285_v5   ;;  %v282_v25 = vld [vmem:[%s275_s18] sm:$0xff]  ;;  %v283_v28 = vld [vmem:[%s275_s18 + $0x8] sm:$0xff] }
  0x13   : > { %v321_v31 = vrot.slane %v282_v25, %v320_v23  ;;  %v333_v32 = vrot.slane %v283_v28, %v1669_v24  ;;  %v329_v34 = vrot.slane %v282_v25, %v328_v26  ;;  %v341_v36 = vrot.slane %v283_v28, %v324_v27 }
  0x14   : > { %v317_v37 = vrot.slane %v282_v25, %v1669_v24  ;;  %v325_v38 = vrot.slane %v282_v25, %v324_v27  ;;  %v337_v39 = vrot.slane %v283_v28, %v320_v23  ;;  %v505_v40 = vrot.slane %v283_v28, %v488_v29 }
  0x15   : > { %1412 = vset.pattern.permute.xlu0 %v1553_v7  ;;  %v513_v41 = vrot.slane %v283_v28, %v496_v30  ;;  %v1680_v42 = vrot.slane %v321_v31, %v1669_v24  ;;  %v345_v43 = vrot.slane %v283_v28, %v328_v26  ;;  %v1683_v44 = vrot.slane %v333_v32, %v1669_v24 }
  0x16   : > { %1411 = vset.pattern.permute.xlu1 %v1552_v3  ;;  %471 = vperm.xlu0 %1412, %v284_v2   ;;  %v493_v45 = vrot.slane %v282_v25, %v492_v33  ;;  %v1686_v46 = vrot.slane %v329_v34, %v1669_v24  ;;  %v501_v47 = vrot.slane %v282_v25, %v500_v35 }
  0x17   : > { %304 = vperm.xlu1 %1411, %v286_v8   ;;  %v1689_v50 = vrot.slane %v341_v36, %v1669_v24  ;;  %v1692_v51 = vrot.slane %v317_v37, %v1669_v24  ;;  %v489_v52 = vrot.slane %v282_v25, %v488_v29  ;;  %v1695_v53 = vrot.slane %v325_v38, %v1669_v24 }
  0x18   : > { %v497_v54 = vrot.slane %v282_v25, %v496_v30  ;;  %v1698_v55 = vrot.slane %v337_v39, %v1669_v24  ;;  %v509_v56 = vrot.slane %v283_v28, %v492_v33  ;;  %v517_v57 = vrot.slane %v283_v28, %v500_v35 }
  0x19   : > { %v1700_v58 = vrot.slane %v505_v40, %v488_v29  ;;  %v1702_v59 = vrot.slane %v513_v41, %v488_v29  ;;  %v1706_v61 = vrot.slane %v345_v43, %v1669_v24  ;;  %v1709_v63 = vrot.slane %v493_v45, %v488_v29 }
  0x1a   : > { %479 = vperm.xlu0 %1412, %v286_v8   ;;  %v1712_v1 = vrot.slane %v501_v47, %v488_v29  ;;  %v1719_v8 = vrot.slane %v497_v54, %v488_v29 }
  0x1b   : > { %430 = vperm.xlu1 %1411, %v290_v9  }
  0x1e   : > { %1415 = vset.pattern.permute.xlu0 %v1552_v3 }
  0x1f   : > { %435 = vperm.xlu1 %1411, %v291_v10   ;;  %669 = vperm.xlu0 %1415, %v659_v13   ;;  %v1722_v10 = vrot.slane %v509_v56, %v488_v29 }
  0x23   : > { %1413 = vset.pattern.permute.xlu1 %v1553_v7  ;;  %1089 = vperm.xlu0 %1415, %v1083_v15  }
  0x24   : > { %483 = vperm.xlu1 %1413, %v287_v6   ;;  %v1716_v6 = vrot.slane %v489_v52, %v488_v29 }
  0x27   : > { %1099 = vperm.xlu0 %1415, %v1085_v17  }
  0x28   : > { %1414 = vset.pattern.permute.xlu1 %v1552_v3 }
  0x29   : > { %664 = vperm.xlu1 %1414, %v658_v12   ;;  %v1724_v12 = vrot.slane %v517_v57, %v488_v29 }
  0x2b   : > { %1214 = vperm.xlu0 %1415, %v1211_v19  }
  0x2d   : > { %674 = vperm.xlu1 %1414, %v660_v14  }
  0x31   : > { %679 = vperm.xlu1 %1414, %v661_v16  }
  0x35   : > { %1094 = vperm.xlu1 %1414, %v1084_v18  }
  0x39   : > { %1104 = vperm.xlu1 %1414, %v1086_v20  }
  0x88   : > { %v421_v48 = vpop.permute.xlu1 %420  ;;  %v295_v49 = vpop.permute.xlu0 %294 }
  0x89   : > { %v387_v60 = vmul.f32 %v1680_v42, %v295_v49  ;;  %v390_v62 = vmul.f32 %v1683_v44, %v295_v49  ;;  %v389_v0 = vmul.f32 %v1686_v46, %v295_v49  ;;  %v392_v2 = vmul.f32 %v1689_v50, %v295_v49 }
  0x8a   : > { %v386_v5 = vmul.f32 %v1692_v51, %v295_v49  ;;  %v388_v7 = vmul.f32 %v1695_v53, %v295_v49  ;;  %v391_v9 = vmul.f32 %v1698_v55, %v295_v49  ;;  %v393_v16 = vmul.f32 %v1706_v61, %v295_v49 }
  0x8b   : > { %v439_v14 = vadd.f32 %v421_v48, %v387_v60  ;;  %v441_v17 = vadd.f32 %v421_v48, %v389_v0  ;;  %v1731_v20 = vadd.f32 %v421_v48, %v390_v62  ;;  %v1736_v27 = vadd.f32 %v421_v48, %v392_v2 }
  0x8c   : > { %v426_v3 = vpop.permute.xlu1 %425  ;;  %v300_v4 = vpop.permute.xlu0 %299  ;;  %v438_v25 = vadd.f32 %v421_v48, %v386_v5  ;;  %v440_v26 = vadd.f32 %v421_v48, %v388_v7  ;;  %v1742_v31 = vadd.f32 %v421_v48, %v391_v9  ;;  %v1753_v45 = vadd.f32 %v421_v48, %v393_v16 }
  0x8d   : > { %v395_v13 = vmul.f32 %v1680_v42, %v300_v4  ;;  %v397_v15 = vmul.f32 %v1686_v46, %v300_v4  ;;  %v394_v18 = vmul.f32 %v1692_v51, %v300_v4  ;;  %v396_v19 = vmul.f32 %v1695_v53, %v300_v4 }
  0x8e   : > { %v398_v21 = vmul.f32 %v1683_v44, %v300_v4  ;;  %v400_v28 = vmul.f32 %v1689_v50, %v300_v4  ;;  %v399_v30 = vmul.f32 %v1698_v55, %v300_v4  ;;  %v401_v32 = vmul.f32 %v1706_v61, %v300_v4 }
  0x8f   : > { %v447_v33 = vadd.f32 %v426_v3, %v395_v13  ;;  %v449_v35 = vadd.f32 %v426_v3, %v397_v15  ;;  %v446_v37 = vadd.f32 %v426_v3, %v394_v18  ;;  %v448_v39 = vadd.f32 %v426_v3, %v396_v19 }
  0x90   : > { %v1734_v23 = vpop.permute.xlu0 %309  ;;  %v450_v47 = vadd.f32 %v426_v3, %v398_v21  ;;  %v1757_v56 = vadd.f32 %v426_v3, %v399_v30  ;;  %v452_v57 = vadd.f32 %v426_v3, %v400_v28  ;;  %v1767_v48 = vadd.f32 %v426_v3, %v401_v32 }
  0x91   : > { %v1739_v29 = vpop.permute.xlu1 %475  ;;  %v1761_v60 = vmul.f32 %v1683_v44, %v1734_v23  ;;  %v1771_v2 = vmul.f32 %v1689_v50, %v1734_v23  ;;  %v411_v5 = vmul.f32 %v1680_v42, %v1734_v23  ;;  %v413_v18 = vmul.f32 %v1686_v46, %v1734_v23 }
  0x92   : > { %v567_v34 = vmul.f32 %v1709_v63, %v1739_v29  ;;  %v569_v36 = vmul.f32 %v1712_v1, %v1739_v29  ;;  %v566_v38 = vmul.f32 %v1716_v6, %v1739_v29  ;;  %v568_v40 = vmul.f32 %v1719_v8, %v1739_v29 }
  0x93   : > { %v570_v13 = vmul.f32 %v1700_v58, %v1739_v29  ;;  %v572_v30 = vmul.f32 %v1702_v59, %v1739_v29 }
  0x94   : > { %v599_v41 = vadd.f32 %v567_v34, %v447_v33  ;;  %v601_v43 = vadd.f32 %v569_v36, %v449_v35  ;;  %v598_v52 = vadd.f32 %v566_v38, %v446_v37  ;;  %v600_v54 = vadd.f32 %v568_v40, %v448_v39 }
  0x95   : > { %v1755_v49 = vpop.permute.xlu0 %471 }
  0x96   : > { %v1763_v62 = vpop.permute.xlu1 %304  ;;  %v559_v0 = vmul.f32 %v1709_v63, %v1755_v49  ;;  %1416 = vtanh.f32 %v599_v41  ;;  %v561_v4 = vmul.f32 %v1712_v1, %v1755_v49  ;;  %v558_v9 = vmul.f32 %v1716_v6, %v1755_v49 }
  0x97   : > { %1418 = vtanh.f32 %v601_v43  ;;  %v560_v3 = vmul.f32 %v1719_v8, %v1755_v49  ;;  %v403_v21 = vmul.f32 %v1680_v42, %v1763_v62  ;;  %v405_v28 = vmul.f32 %v1686_v46, %v1763_v62 }
  0x98   : > { %v591_v7 = vadd.f32 %v559_v0, %v439_v14  ;;  %1420 = vtanh.f32 %v598_v52  ;;  %v593_v16 = vadd.f32 %v561_v4, %v441_v17  ;;  %v590_v14 = vadd.f32 %v558_v9, %v438_v25 }
  0x99   : > { %v1783_v15 = vpop.permute.xlu0 %479  ;;  %1422 = vtanh.f32 %v600_v54  ;;  %v592_v32 = vadd.f32 %v560_v3, %v440_v26  ;;  %v410_v17 = vmul.f32 %v1692_v51, %v1734_v23  ;;  %v412_v46 = vmul.f32 %v1695_v53, %v1734_v23 }
  0x9a   : > { %v1787_v19 = vpop.permute.xlu1 %430  ;;  %1424 = vtanh.f32 %v591_v7  ;;  %v575_v25 = vmul.f32 %v1709_v63, %v1783_v15  ;;  %v577_v42 = vmul.f32 %v1712_v1, %v1783_v15  ;;  %v571_v26 = vmul.f32 %v1722_v10, %v1739_v29 }
  0x9b   : > { %1426 = vtanh.f32 %v593_v16  ;;  %v455_v33 = vadd.f32 %v1787_v19, %v403_v21  ;;  %v457_v34 = vadd.f32 %v1787_v19, %v405_v28  ;;  %v402_v37 = vmul.f32 %v1692_v51, %v1763_v62 }
  0x9c   : > { %1428 = vtanh.f32 %v590_v14  ;;  %v574_v38 = vmul.f32 %v1716_v6, %v1783_v15  ;;  %v563_v39 = vmul.f32 %v1722_v10, %v1755_v49  ;;  %v404_v40 = vmul.f32 %v1695_v53, %v1763_v62 }
  0x9d   : > { %1430 = vtanh.f32 %v592_v32  ;;  %v607_v36 = vadd.f32 %v575_v25, %v455_v33  ;;  %v576_v41 = vmul.f32 %v1719_v8, %v1783_v15  ;;  %v573_v43 = vmul.f32 %v1724_v12, %v1739_v29 }
  0x9e   : > { %v1807_v35 = vpop.permute.xlu1 %435  ;;  %v1821_v52 = vadd.f32 %v570_v13, %v450_v47  ;;  %v562_v51 = vmul.f32 %v1700_v58, %v1755_v49  ;;  %v609_v0 = vadd.f32 %v577_v42, %v457_v34  ;;  %v454_v4 = vadd.f32 %v1787_v19, %v402_v37 }
  0x9f   : > { %v1826_v7 = vadd.f32 %v572_v30, %v452_v57  ;;  %v564_v53 = vmul.f32 %v1702_v59, %v1755_v49  ;;  %v463_v3 = vadd.f32 %v1807_v35, %v411_v5  ;;  %v456_v16 = vadd.f32 %v1787_v19, %v404_v40 }
  0xa0   : > { %v1417_v54 = vpop.eup %1416  ;;  %v595_v29 = vadd.f32 %v563_v39, %v1742_v31  ;;  %1432 = vtanh.f32 %v607_v36  ;;  %v465_v13 = vadd.f32 %v1807_v35, %v413_v18  ;;  %v462_v14 = vadd.f32 %v1807_v35, %v410_v17 }
  0xa1   : > { %v1419_v9 = vpop.eup %1418  ;;  %v606_v21 = vadd.f32 %v574_v38, %v454_v4  ;;  %1434 = vtanh.f32 %v609_v0  ;;  %v464_v30 = vadd.f32 %v1807_v35, %v412_v46  ;;  %v608_v32 = vadd.f32 %v576_v41, %v456_v16 }
  0xa2   : > { %v1421_v47 = vpop.eup %1420  ;;  %v603_v5 = vadd.f32 %v571_v26, %v1757_v56  ;;  %1436 = vtanh.f32 %v595_v29  ;;  %v565_v18 = vmul.f32 %v1724_v12, %v1755_v49  ;;  %v407_v40 = vmul.f32 %v1698_v55, %v1763_v62 }
  0xa3   : > { %v1423_v28 = vpop.eup %1422  ;;  %v1835_v57 = vpop.permute.xlu1 %483  ;;  %1438 = vtanh.f32 %v606_v21  ;;  %v605_v41 = vadd.f32 %v573_v43, %v1767_v48  ;;  %v579_v4 = vmul.f32 %v1722_v10, %v1783_v15  ;;  %v596_v43 = vadd.f32 %v564_v53, %v1736_v27 }
  0xa4   : > { %v1425_v33 = vpop.eup %1424  ;;  %v583_v31 = vmul.f32 %v1709_v63, %v1835_v57  ;;  %v585_v25 = vmul.f32 %v1712_v1, %v1835_v57  ;;  %v582_v42 = vmul.f32 %v1716_v6, %v1835_v57  ;;  %v584_v56 = vmul.f32 %v1719_v8, %v1835_v57 }
  0xa5   : > { %v1427_v17 = vpop.eup %1426  ;;  %v1364_v34 = vpack.c.bf16 %v1417_v54, %v1425_v33  ;;  %1440 = vtanh.f32 %v608_v32  ;;  %v597_v6 = vadd.f32 %v565_v18, %v1753_v45  ;;  %v406_v8 = vmul.f32 %v1683_v44, %v1763_v62 }
  0xa6   : > { %v1429_v46 = vpop.eup %1428  ;;  %v1372_v26 = vpack.c.bf16 %v1419_v9, %v1427_v17  ;;  %v615_v36 = vadd.f32 %v583_v31, %v463_v3  ;;  %v617_v63 = vadd.f32 %v585_v25, %v465_v13  ;;  %v614_v38 = vadd.f32 %v582_v42, %v462_v14 }
  0xa7   : > { %v1431_v37 = vpop.eup %1430  ;;  %1365 = vmatprep.subr.bf16.mxu0 %v1364_v34  ;;  %v1366_v1 = vpack.c.bf16 %v1421_v47, %v1429_v46  ;;  %v616_v39 = vadd.f32 %v584_v56, %v464_v30  ;;  %1442 = vtanh.f32 %v603_v5  ;;  %v594_v54 = vadd.f32 %v562_v51, %v1731_v20 }
  0xa8   : > { %1373 = vmatprep.subr.bf16.mxu1 %v1372_v26  ;;  %v1374_v49 = vpack.c.bf16 %v1423_v28, %v1431_v37  ;;  %1444 = vtanh.f32 %v615_v36  ;;  %v459_v0 = vadd.f32 %v1787_v19, %v407_v40  ;;  %v409_v45 = vmul.f32 %v1706_v61, %v1763_v62 }
  0xa9   : > { %1367 = vmatpush1.bf16.msra.mxu0 %v1366_v1  ;;  %1446 = vtanh.f32 %v617_v63  ;;  %v408_v9 = vmul.f32 %v1689_v50, %v1763_v62  ;;  %v415_v44 = vmul.f32 %v1698_v55, %v1734_v23  ;;  %v587_v20 = vmul.f32 %v1722_v10, %v1835_v57 }
  0xaa   : > { %1375 = vmatpush1.bf16.msra.mxu1 %v1374_v49  ;;  %1448 = vtanh.f32 %v614_v38  ;;  %v1433_v48 = vpop.eup %1432  ;;  %v461_v51 = vadd.f32 %v1787_v19, %v409_v45  ;;  %v581_v3 = vmul.f32 %v1724_v12, %v1783_v15  ;;  %v417_v62 = vmul.f32 %v1706_v61, %v1734_v23  ;;  %v655_v38 = vld [vmem:[%s2045_s3 + $0x8] sm:$0xff] }
  0xab   : > { %1450 = vtanh.f32 %v616_v39  ;;  %v1435_v16 = vpop.eup %1434  ;;  %v467_v50 = vadd.f32 %v1807_v35, %v415_v44  ;;  %v589_v55 = vmul.f32 %v1724_v12, %v1835_v57  ;;  %v458_v29 = vadd.f32 %v1787_v19, %v406_v8 }
  0xac   : > { %1452 = vtanh.f32 %v597_v6  ;;  %v1437_v10 = vpop.eup %1436  ;;  %v578_v27 = vmul.f32 %v1700_v58, %v1783_v15  ;;  %v611_v53 = vadd.f32 %v579_v4, %v459_v0  ;;  %v586_v13 = vmul.f32 %v1700_v58, %v1835_v57 }
  0xad   : > { %1454 = vtanh.f32 %v605_v41  ;;  %v1439_v47 = vpop.eup %1438  ;;  %v619_v14 = vadd.f32 %v587_v20, %v467_v50  ;;  %v469_v61 = vadd.f32 %v1807_v35, %v417_v62  ;;  %v460_v12 = vadd.f32 %v1787_v19, %v408_v9 }
  0xae   : > { %1456 = vtanh.f32 %v594_v54  ;;  %v580_v21 = vmul.f32 %v1702_v59, %v1783_v15  ;;  %v613_v28 = vadd.f32 %v581_v3, %v461_v51  ;;  %v466_v32 = vadd.f32 %v1807_v35, %v1761_v60  ;;  %v656_v54 = vld [vmem:[%s2045_s3 + $0x10] sm:$0xff]  ;;  %v1935_v51 = vpop.permute.xlu1 %664  ;;  %v1937_v3 = vpop.permute.xlu0 %669 }
  0xaf   : > { %1458 = vtanh.f32 %v1821_v52  ;;  %v1441_v23 = vpop.eup %1440  ;;  %v588_v58 = vmul.f32 %v1702_v59, %v1835_v57  ;;  %v621_v52 = vadd.f32 %v589_v55, %v469_v61  ;;  %v610_v33 = vadd.f32 %v578_v27, %v458_v29 }
  0xb0   : > { %1460 = vtanh.f32 %v596_v43  ;;  %v468_v19 = vadd.f32 %v1807_v35, %v1771_v2  ;;  %v618_v25 = vadd.f32 %v586_v13, %v466_v32  ;;  %v612_v60 = vadd.f32 %v580_v21, %v460_v12  ;;  %v654_v2 = vld [vmem:[%s2045_s3] sm:$0xff] }
  0xb1   : > { %v1443_v30 = vpop.eup %1442  ;;  %1462 = vtanh.f32 %v1826_v7 }
  0xb2   : > { %v1445_v5 = vpop.eup %1444  ;;  %1464 = vtanh.f32 %v611_v53  ;;  %v620_v7 = vadd.f32 %v588_v58, %v468_v19  ;;  %v1380_v56 = vpack.c.bf16 %v1443_v30, %v1437_v10  ;;  %v1939_v50 = vpop.permute.xlu1 %674 }
  0xb3   : > { %v1447_v31 = vpop.eup %1446  ;;  %v1368_v15 = vpack.c.bf16 %v1445_v5, %v1433_v48  ;;  %1466 = vtanh.f32 %v619_v14  ;;  %v657_v48 = vld [vmem:[%s2045_s3 + $0x18] sm:$0xff]  ;;  %v1944_v53 = vpop.permute.xlu0 %1089 }
  0xb4   : > { %v1449_v18 = vpop.eup %1448  ;;  %v1376_v17 = vpack.c.bf16 %v1447_v31, %v1435_v16  ;;  %1468 = vtanh.f32 %v613_v28 }
  0xb5   : > { %v1451_v34 = vpop.eup %1450  ;;  %1369 = vmatprep.subr.bf16.mxu0 %v1368_v15  ;;  %v1370_v59 = vpack.c.bf16 %v1449_v18, %v1439_v47  ;;  %1470 = vtanh.f32 %v621_v52 }
  0xb6   : > { %v1453_v57 = vpop.eup %1452  ;;  %1377 = vmatprep.subr.bf16.mxu1 %v1376_v17  ;;  %v1378_v42 = vpack.c.bf16 %v1451_v34, %v1441_v23  ;;  %1472 = vtanh.f32 %v610_v33  ;;  %v1953_v52 = vpop.permute.xlu1 %679 }
  0xb7   : > { %v1455_v46 = vpop.eup %1454  ;;  %1371 = vmatpush1.bf16.msra.mxu0 %v1370_v59  ;;  %1474 = vtanh.f32 %v618_v25  ;;  %v1950_v30 = vpop.permute.xlu0 %1099 }
  0xb8   : > { %v1457_v35 = vpop.eup %1456  ;;  %1379 = vmatpush1.bf16.msra.mxu1 %v1378_v42  ;;  %1381 = vmatprep.subr.bf16.mxu0 %v1380_v56  ;;  %v1388_v26 = vpack.c.bf16 %v1455_v46, %v1453_v57  ;;  %1476 = vtanh.f32 %v612_v60  ;;  %v1555_v60 = vmov 1966171168  }
  0xb9   : > { %v1459_v36 = vpop.eup %1458  ;;  %1478 = vtanh.f32 %v620_v7  ;;  %v1959_v34 = vunpack.c.l.s4 %v1555_v60 }
  0xba   : > { %v1461_v63 = vpop.eup %1460  ;;  %1389 = vmatprep.subr.bf16.mxu1 %v1388_v26  ;;  %1346 = vmatmul.mubr.msk.f32.vlgmr.msra.gmra.mrb[0].mxu0 %vm682_vm0, %v654_v2  ;;  %v1382_v37 = vpack.c.bf16 %v1459_v36, %v1457_v35 }
  0xbb   : > { %v1463_v1 = vpop.eup %1462  ;;  %1350 = vmatmul.mubr.msk.f32.vlgmr.msra.gmra.mrb[0].mxu1 %vm682_vm0, %v654_v2  ;;  %765 = vmatprep.mubr.f32.mxu0 %v1554_v11  ;;  %v1215_v59 = vpop.permute.xlu0 %1214 }
  0xbc   : > { %v1465_v39 = vpop.eup %1464  ;;  %1383 = vmatpush1.bf16.msra.mxu0 %v1382_v37  ;;  %v1390_v49 = vpack.c.bf16 %v1463_v1, %v1461_v63  ;;  %854 = vmatprep.mubr.f32.mxu1 %v1554_v11  ;;  %v1965_v37 = vpop.permute.xlu1 %1094 }
  0xbd   : > { %v1467_v6 = vpop.eup %1466 }
  0xbe   : > { %v1469_v40 = vpop.eup %1468  ;;  %1391 = vmatpush1.bf16.msra.mxu1 %v1390_v49  ;;  %v1384_v8 = vpack.c.bf16 %v1467_v6, %v1465_v39  ;;  %1347 = vmatmul.mubr.msk.f32.gmra.mrb[2].mxu0 %vm682_vm0, %v655_v38  ;;  %v1243_v39 = vunpack.c.0.s8 %v1959_v34  ;;  %v1969_v49 = vrot.slane %v1215_v59, %v1669_v24 }
  0xbf   : > { %v1471_v41 = vpop.eup %1470  ;;  %1351 = vmatmul.mubr.msk.f32.gmra.mrb[2].mxu1 %vm682_vm0, %v655_v38  ;;  %771 = vmatprep.mubr.f32.mxu0 %v1554_v11 }
  0xc0   : > { %v1473_v0 = vpop.eup %1472  ;;  %1385 = vmatprep.subr.bf16.mxu0 %v1384_v8  ;;  %v1392_v4 = vpack.c.bf16 %v1471_v41, %v1469_v40  ;;  %860 = vmatprep.mubr.f32.mxu1 %v1554_v11 }
  0xc1   : > { %v1475_v45 = vpop.eup %1474 }
  0xc2   : > { %v1477_v9 = vpop.eup %1476  ;;  %1393 = vmatprep.subr.bf16.mxu1 %v1392_v4  ;;  %v1386_v44 = vpack.c.bf16 %v1475_v45, %v1473_v0  ;;  %1348 = vmatmul.mubr.msk.f32.gmra.mrb[4].mxu0 %vm682_vm0, %v656_v54 }
  0xc3   : > { %v1479_v20 = vpop.eup %1478  ;;  %1352 = vmatmul.mubr.msk.f32.gmra.mrb[4].mxu1 %vm682_vm0, %v656_v54  ;;  %777 = vmatprep.mubr.f32.mxu0 %v1554_v11 }
  0xc4   : > { %1387 = vmatpush1.bf16.msra.mxu0 %v1386_v44  ;;  %v1394_v43 = vpack.c.bf16 %v1479_v20, %v1477_v9  ;;  %866 = vmatprep.mubr.f32.mxu1 %v1554_v11 }
  0xc6   : > { %1395 = vmatpush1.bf16.msra.mxu1 %v1394_v43  ;;  %1349 = vmatmul.mubr.msk.f32.gmra.mrb[6].mxu0 %vm682_vm0, %v657_v48 }
  0xc7   : > { %1353 = vmatmul.mubr.msk.f32.gmra.mrb[6].mxu1 %vm682_vm0, %v657_v48  ;;  %937 = vmatprep.mubr.f32.mxu0 %v1554_v11 }
  0xc8   : > { %1026 = vmatprep.mubr.f32.mxu1 %v1554_v11 }
  0xca   : > { %1354 = vmatmul.mubr.msk.f32.vlgmr.msra.gmra.mrb[8].mxu0 %vm682_vm0, %v654_v2 }
  0xcb   : > { %1358 = vmatmul.mubr.msk.f32.vlgmr.msra.gmra.mrb[8].mxu1 %vm682_vm0, %v654_v2  ;;  %943 = vmatprep.mubr.f32.mxu0 %v1554_v11 }
  0xcc   : > { %1032 = vmatprep.mubr.f32.mxu1 %v1554_v11 }
  0xce   : > { %1355 = vmatmul.mubr.msk.f32.gmra.mrb[10].mxu0 %vm682_vm0, %v655_v38 }
  0xcf   : > { %1359 = vmatmul.mubr.msk.f32.gmra.mrb[10].mxu1 %vm682_vm0, %v655_v38  ;;  %949 = vmatprep.mubr.f32.mxu0 %v1554_v11 }
  0xd0   : > { %1038 = vmatprep.mubr.f32.mxu1 %v1554_v11 }
  0xd2   : > { %1356 = vmatmul.mubr.msk.f32.gmra.mrb[12].mxu0 %vm682_vm0, %v656_v54 }
  0xd3   : > { %1360 = vmatmul.mubr.msk.f32.gmra.mrb[12].mxu1 %vm682_vm0, %v656_v54  ;;  %955 = vmatprep.mubr.f32.mxu0 %v1554_v11 }
  0xd4   : > { %1044 = vmatprep.mubr.f32.mxu1 %v1554_v11 }
  0xd6   : > { %1357 = vmatmul.mubr.msk.f32.gmra.mrb[14].mxu0 %vm682_vm0, %v657_v48 }
  0xd7   : > { %1361 = vmatmul.mubr.msk.f32.gmra.mrb[14].mxu1 %vm682_vm0, %v657_v48 }
 0x18d   : > { %v761_v16 = vpop.f32.mrb[0].mxu0 }
 0x18e   : > { %v850_v62 = vpop.f32.mrb[0].mxu1  ;;  %v762_v55 = vadd.f32 %v761_v16, %v1935_v51  ;;  %v763_v10 = vpop.f32.mrb[1].mxu0 }
 0x18f   : > { %v851_v29 = vadd.f32 %v850_v62, %v1935_v51  ;;  %v764_v27 = vadd.f32 %v763_v10, %v1935_v51  ;;  %v852_v11 = vpop.f32.mrb[1].mxu1 }
 0x190   : > { %1480 = vtanh.f32 %v762_v55  ;;  %v853_v47 = vadd.f32 %v852_v11, %v1935_v51 }
 0x191   : > { %1482 = vtanh.f32 %v851_v29  ;;  %v767_v13 = vpop.f32.mrb[2].mxu0 }
 0x192   : > { %1484 = vtanh.f32 %v764_v27  ;;  %v768_v14 = vadd.f32 %v767_v13, %v1937_v3  ;;  %v856_v61 = vpop.f32.mrb[2].mxu1  ;;  %v769_v23 = vpop.f32.mrb[3].mxu0 }
 0x193   : > { %1486 = vtanh.f32 %v853_v47  ;;  %v857_v12 = vadd.f32 %v856_v61, %v1937_v3  ;;  %v770_v21 = vadd.f32 %v769_v23, %v1937_v3  ;;  %v858_v28 = vpop.f32.mrb[3].mxu1 }
 0x194   : > { %1488 = vtanh.f32 %v768_v14  ;;  %v859_v32 = vadd.f32 %v858_v28, %v1937_v3 }
 0x195   : > { %1490 = vtanh.f32 %v857_v12  ;;  %v773_v58 = vpop.f32.mrb[4].mxu0 }
 0x196   : > { %1492 = vtanh.f32 %v770_v21  ;;  %v774_v5 = vadd.f32 %v773_v58, %v1939_v50  ;;  %v862_v33 = vpop.f32.mrb[4].mxu1  ;;  %v775_v31 = vpop.f32.mrb[5].mxu0 }
 0x197   : > { %1494 = vtanh.f32 %v859_v32  ;;  %v863_v19 = vadd.f32 %v862_v33, %v1939_v50  ;;  %v776_v15 = vadd.f32 %v775_v31, %v1939_v50  ;;  %v864_v25 = vpop.f32.mrb[5].mxu1 }
 0x198   : > { %1496 = vtanh.f32 %v774_v5  ;;  %v865_v18 = vadd.f32 %v864_v25, %v1939_v50  ;;  %v1990_v25 = vpop.permute.xlu1 %1104 }
 0x199   : > { %1498 = vtanh.f32 %v863_v19  ;;  %v779_v17 = vpop.f32.mrb[6].mxu0 }
 0x19a   : > { %v1481_v7 = vpop.eup %1480  ;;  %1500 = vtanh.f32 %v776_v15  ;;  %v780_v57 = vadd.f32 %v779_v17, %v1953_v52  ;;  %v868_v42 = vpop.f32.mrb[6].mxu1 }
 0x19b   : > { %v781_v56 = vpop.f32.mrb[7].mxu0  ;;  %v1483_v46 = vpop.eup %1482  ;;  %1502 = vtanh.f32 %v865_v18  ;;  %v869_v2 = vadd.f32 %v868_v42, %v1953_v52  ;;  %v1107_v40 = vmul.f32 %v1481_v7, %v1944_v53 }
 0x19c   : > { %v782_v35 = vadd.f32 %v781_v56, %v1953_v52  ;;  %v870_v26 = vpop.f32.mrb[7].mxu1  ;;  %v1485_v36 = vpop.eup %1484  ;;  %1504 = vtanh.f32 %v780_v57  ;;  %v1109_v8 = vmul.f32 %v1483_v46, %v1944_v53 }
 0x19d   : > { %v871_v63 = vadd.f32 %v870_v26, %v1953_v52  ;;  %v1487_v1 = vpop.eup %1486  ;;  %1506 = vtanh.f32 %v869_v2  ;;  %v939_v38 = vpop.f32.mrb[8].mxu0  ;;  %v1108_v48 = vmul.f32 %v1485_v36, %v1944_v53 }
 0x19e   : > { %v1489_v6 = vpop.eup %1488  ;;  %1508 = vtanh.f32 %v782_v35  ;;  %v940_v41 = vadd.f32 %v939_v38, %v1935_v51  ;;  %v1028_v54 = vpop.f32.mrb[8].mxu1  ;;  %v1110_v55 = vmul.f32 %v1487_v1, %v1944_v53 }
 0x19f   : > { %v941_v0 = vpop.f32.mrb[9].mxu0  ;;  %v1491_v4 = vpop.eup %1490  ;;  %1510 = vtanh.f32 %v871_v63  ;;  %v1029_v45 = vadd.f32 %v1028_v54, %v1935_v51  ;;  %v1115_v9 = vmul.f32 %v1489_v6, %v1965_v37 }
 0x1a0   : > { %v942_v44 = vadd.f32 %v941_v0, %v1935_v51  ;;  %v1030_v24 = vpop.f32.mrb[9].mxu1  ;;  %v1493_v20 = vpop.eup %1492  ;;  %1512 = vtanh.f32 %v940_v41  ;;  %v1117_v43 = vmul.f32 %v1491_v4, %v1965_v37 }
 0x1a1   : > { %v1031_v16 = vadd.f32 %v1030_v24, %v1935_v51  ;;  %v1495_v62 = vpop.eup %1494  ;;  %1514 = vtanh.f32 %v1029_v45  ;;  %v1116_v10 = vmul.f32 %v1493_v20, %v1965_v37  ;;  %v945_v29 = vpop.f32.mrb[10].mxu0  ;;  %v1139_v27 = vadd.f32 %v1115_v9, %v1107_v40 }
 0x1a2   : > { %v1497_v11 = vpop.eup %1496  ;;  %v1118_v47 = vmul.f32 %v1495_v62, %v1965_v37  ;;  %1516 = vtanh.f32 %v942_v44  ;;  %v946_v13 = vadd.f32 %v945_v29, %v1937_v3  ;;  %v1034_v14 = vpop.f32.mrb[10].mxu1  ;;  %v1157_v23 = vadd.f32 %v1117_v43, %v1109_v8 }
 0x1a3   : > { %v947_v61 = vpop.f32.mrb[11].mxu0  ;;  %v1499_v12 = vpop.eup %1498  ;;  %1518 = vtanh.f32 %v1031_v16  ;;  %v1035_v51 = vadd.f32 %v1034_v14, %v1937_v3  ;;  %v1123_v21 = vmul.f32 %v1497_v11, %v1950_v30  ;;  %v1148_v31 = vadd.f32 %v1116_v10, %v1108_v48 }
 0x1a4   : > { %v948_v28 = vadd.f32 %v947_v61, %v1937_v3  ;;  %v1036_v32 = vpop.f32.mrb[11].mxu1  ;;  %v1501_v58 = vpop.eup %1500  ;;  %1520 = vtanh.f32 %v946_v13  ;;  %v1125_v5 = vmul.f32 %v1499_v12, %v1950_v30  ;;  %v1166_v17 = vadd.f32 %v1118_v47, %v1110_v55 }
 0x1a5   : > { %v1037_v33 = vadd.f32 %v1036_v32, %v1937_v3  ;;  %v1503_v19 = vpop.eup %1502  ;;  %1522 = vtanh.f32 %v1035_v51  ;;  %v1124_v15 = vmul.f32 %v1501_v58, %v1950_v30  ;;  %v1140_v18 = vadd.f32 %v1139_v27, %v1123_v21  ;;  %v951_v60 = vpop.f32.mrb[12].mxu0 }
 0x1a6   : > { %v1505_v59 = vpop.eup %1504  ;;  %v1126_v7 = vmul.f32 %v1503_v19, %v1950_v30  ;;  %1524 = vtanh.f32 %v948_v28  ;;  %v1158_v57 = vadd.f32 %v1157_v23, %v1125_v5  ;;  %v952_v42 = vadd.f32 %v951_v60, %v1939_v50  ;;  %v1040_v56 = vpop.f32.mrb[12].mxu1 }
 0x1a7   : > { %v953_v46 = vpop.f32.mrb[13].mxu0  ;;  %v1507_v3 = vpop.eup %1506  ;;  %1526 = vtanh.f32 %v1037_v33  ;;  %v1131_v2 = vmul.f32 %v1505_v59, %v1990_v25  ;;  %v1149_v35 = vadd.f32 %v1148_v31, %v1124_v15  ;;  %v1041_v26 = vadd.f32 %v1040_v56, %v1939_v50 }
 0x1a8   : > { %v1042_v36 = vpop.f32.mrb[13].mxu1  ;;  %v1509_v63 = vpop.eup %1508  ;;  %v1133_v1 = vmul.f32 %v1507_v3, %v1990_v25  ;;  %v1167_v38 = vadd.f32 %v1166_v17, %v1126_v7  ;;  %1528 = vtanh.f32 %v952_v42  ;;  %v954_v6 = vadd.f32 %v953_v46, %v1939_v50 }
 0x1a9   : > { %v1511_v40 = vpop.eup %1510  ;;  %v1132_v8 = vmul.f32 %v1509_v63, %v1990_v25  ;;  %v1141_v41 = vadd.f32 %v1140_v18, %v1131_v2  ;;  %1530 = vtanh.f32 %v1041_v26  ;;  %v1043_v54 = vadd.f32 %v1042_v36, %v1939_v50  ;;  %v957_v0 = vpop.f32.mrb[14].mxu0 }
 0x1aa   : > { %v1513_v4 = vpop.eup %1512  ;;  %v1134_v45 = vmul.f32 %v1511_v40, %v1990_v25  ;;  %v1159_v9 = vadd.f32 %v1158_v57, %v1133_v1  ;;  %1532 = vtanh.f32 %v954_v6  ;;  %v958_v44 = vadd.f32 %v957_v0, %v1953_v52  ;;  %v1046_v24 = vpop.f32.mrb[14].mxu1 }
 0x1ab   : > { %v959_v20 = vpop.f32.mrb[15].mxu0  ;;  %v1515_v48 = vpop.eup %1514  ;;  %v1111_v43 = vmul.f32 %v1513_v4, %v1944_v53  ;;  %v1142_v16 = vrot.slane %v1141_v41, 4  ;;  %v1150_v62 = vadd.f32 %v1149_v35, %v1132_v8  ;;  %1534 = vtanh.f32 %v1043_v54 }
 0x1ac   : > { %v2003_v55 = vpop.f32.mrb[15].mxu1  ;;  %v1517_v10 = vpop.eup %1516  ;;  %v1113_v50 = vmul.f32 %v1515_v48, %v1944_v53  ;;  %v1160_v29 = vrot.slane %v1159_v9, 4  ;;  %v1168_v27 = vadd.f32 %v1167_v38, %v1134_v45  ;;  %1536 = vtanh.f32 %v958_v44 }
 0x1ad   : > { %v1519_v11 = vpop.eup %1518  ;;  %v1112_v47 = vmul.f32 %v1517_v10, %v1944_v53  ;;  %v1143_v13 = vadd.f32 %v1142_v16, %v1141_v41  ;;  %v1151_v14 = vrot.slane %v1150_v62, 4  ;;  %v1047_v61 = vadd.f32 %v1046_v24, %v1953_v52 }
 0x1ae   : > { %v1521_v23 = vpop.eup %1520  ;;  %v1114_v12 = vmul.f32 %v1519_v11, %v1944_v53  ;;  %v1161_v51 = vadd.f32 %v1160_v29, %v1159_v9  ;;  %v1169_v21 = vrot.slane %v1168_v27, 4  ;;  %v960_v28 = vadd.f32 %v959_v20, %v1953_v52 }
 0x1af   : > { %v1523_v32 = vpop.eup %1522  ;;  %v1119_v58 = vmul.f32 %v1521_v23, %v1965_v37  ;;  %v1144_v5 = vrot.slane %v1143_v13, 2  ;;  %v1152_v33 = vadd.f32 %v1151_v14, %v1150_v62  ;;  %1538 = vtanh.f32 %v1047_v61 }
 0x1b0   : > { %v1525_v31 = vpop.eup %1524  ;;  %v1121_v19 = vmul.f32 %v1523_v32, %v1965_v37  ;;  %v1162_v15 = vrot.slane %v1161_v51, 2  ;;  %v1170_v18 = vadd.f32 %v1169_v21, %v1168_v27  ;;  %1540 = vtanh.f32 %v960_v28 }
 0x1b1   : > { %v1527_v17 = vpop.eup %1526  ;;  %v1175_v60 = vadd.f32 %v1119_v58, %v1111_v43  ;;  %v1120_v53 = vmul.f32 %v1525_v31, %v1965_v37  ;;  %v1145_v59 = vadd.f32 %v1144_v5, %v1143_v13  ;;  %v1153_v7 = vrot.slane %v1152_v33, 2 }
 0x1b2   : > { %v1529_v57 = vpop.eup %1528  ;;  %v1193_v42 = vadd.f32 %v1121_v19, %v1113_v50  ;;  %v1122_v56 = vmul.f32 %v1527_v17, %v1965_v37  ;;  %v1163_v46 = vadd.f32 %v1162_v15, %v1161_v51  ;;  %v1171_v3 = vrot.slane %v1170_v18, 2 }
 0x1b3   : > { %v1531_v2 = vpop.eup %1530  ;;  %v1184_v35 = vadd.f32 %v1120_v53, %v1112_v47  ;;  %v1146_v26 = vrot.slane %v1145_v59, 1  ;;  %v1154_v36 = vadd.f32 %v1153_v7, %v1152_v33  ;;  %v1127_v63 = vmul.f32 %v1529_v57, %v1950_v30 }
 0x1b4   : > { %v1533_v1 = vpop.eup %1532  ;;  %v1202_v38 = vadd.f32 %v1122_v56, %v1114_v12  ;;  %v1164_v6 = vrot.slane %v1163_v46, 1  ;;  %v1172_v40 = vadd.f32 %v1171_v3, %v1170_v18  ;;  %v1129_v8 = vmul.f32 %v1531_v2, %v1950_v30 }
 0x1b5   : > { %v1535_v41 = vpop.eup %1534  ;;  %v1147_v54 = vadd.f32 %v1146_v26, %v1145_v59  ;;  %v1155_v0 = vrot.slane %v1154_v36, 1  ;;  %v1176_v4 = vadd.f32 %v1175_v60, %v1127_v63  ;;  %v1128_v37 = vmul.f32 %v1533_v1, %v1950_v30 }
 0x1b6   : > { %v1537_v45 = vpop.eup %1536  ;;  %v1165_v9 = vadd.f32 %v1164_v6, %v1163_v46  ;;  %v1173_v44 = vrot.slane %v1172_v40, 1  ;;  %v1194_v24 = vadd.f32 %v1193_v42, %v1129_v8  ;;  %v1130_v20 = vmul.f32 %v1535_v41, %v1950_v30 }
 0x1b7   : > { %v1156_v48 = vadd.f32 %v1155_v0, %v1154_v36  ;;  %v1185_v43 = vadd.f32 %v1184_v35, %v1128_v37  ;;  %v1221_v16 = vadd.f32 %v1969_v49, %v1147_v54  ;;  %v1135_v62 = vmul.f32 %v1537_v45, %v1990_v25 }
 0x1b8   : > { %v1174_v10 = vadd.f32 %v1173_v44, %v1172_v40  ;;  %v1203_v50 = vadd.f32 %v1202_v38, %v1130_v20  ;;  %v1223_v29 = vadd.f32 %v1969_v49, %v1165_v9  ;;  %v1049_v27 = vadd.f32 %v2003_v55, %v1953_v52 }
 0x1b9   : > { %v1539_v11 = vpop.eup %1538  ;;  %v1246_v47 = vsub.s32 %v1243_v39, %v1662_v22  ;;  %v1222_v30 = vadd.f32 %v1969_v49, %v1156_v48  ;;  %v1177_v13 = vadd.f32 %v1176_v4, %v1135_v62 }
 0x1ba   : > { %v1541_v14 = vpop.eup %1540  ;;  %v1224_v61 = vadd.f32 %v1969_v49, %v1174_v10  ;;  %v1137_v23 = vmul.f32 %v1539_v11, %v1990_v25  ;;  %1542 = vtanh.f32 %v1049_v27 }
 0x1bb   : > { %v1237_v12 = vcombine.low %v1221_v16, %v1222_v30  ;;  %v1178_v51 = vrot.slane %v1177_v13, 4  ;;  %v1136_v21 = vmul.f32 %v1541_v14, %v1990_v25 }
 0x1bc   : > { %v1238_v28 = vcombine.low %v1223_v29, %v1224_v61  ;;  %v1195_v52 = vadd.f32 %v1194_v24, %v1137_v23 }
 0x1bd   : > { %v1247_v55 = vrot.slane %v1237_v12, %v1246_v47  ;;  %v1179_v32 = vadd.f32 %v1178_v51, %v1177_v13  ;;  %v1186_v58 = vadd.f32 %v1185_v43, %v1136_v21 }
 0x1be   : > { %v1254_v34 = vrot.slane %v1238_v28, %v1246_v47  ;;  %v1196_v22 = vrot.slane %v1195_v52, 4 }
 0x1bf   : > { %v1180_v39 = vrot.slane %v1179_v32, 2  ;;  %v1187_v5 = vrot.slane %v1186_v58, 4 }
 0x1c0   : > { %v1197_v33 = vadd.f32 %v1196_v22, %v1195_v52  ;;  %v1269_v31 = vcombine.low %v1247_v55, %v1254_v34 }
 0x1c1   : > { %v1181_v19 = vadd.f32 %v1180_v39, %v1179_v32  ;;  %v1188_v15 = vadd.f32 %v1187_v5, %v1186_v58 }
 0x1c2   : > { %v1198_v17 = vrot.slane %v1197_v33, 2  ;;  %v1277_v9 = vrot.slane %v1269_v31, %v1246_v47 }
 0x1c3   : > { %v1182_v18 = vrot.slane %v1181_v19, 1  ;;  %v1189_v60 = vrot.slane %v1188_v15, 2 }
 0x1c4   : > { %v1543_v53 = vpop.eup %1542  ;;  %v1199_v42 = vadd.f32 %v1198_v17, %v1197_v33 }
 0x1c5   : > { %v1183_v59 = vadd.f32 %v1182_v18, %v1181_v19  ;;  %v1190_v7 = vadd.f32 %v1189_v60, %v1188_v15  ;;  %v1138_v57 = vmul.f32 %v1543_v53, %v1990_v25 }
 0x1c6   : > { %v1200_v26 = vrot.slane %v1199_v42, 1 }
 0x1c7   : > { %v1191_v56 = vrot.slane %v1190_v7, 1  ;;  %v1204_v46 = vadd.f32 %v1203_v50, %v1138_v57  ;;  %v1225_v3 = vadd.f32 %v1969_v49, %v1183_v59 }
 0x1c8   : > { %v1201_v6 = vadd.f32 %v1200_v26, %v1199_v42 }
 0x1c9   : > { %v1192_v2 = vadd.f32 %v1191_v56, %v1190_v7  ;;  %v1205_v35 = vrot.slane %v1204_v46, 4 }
 0x1ca   : > { %v1227_v41 = vadd.f32 %v1969_v49, %v1201_v6 }
 0x1cb   : > { %v1226_v36 = vadd.f32 %v1969_v49, %v1192_v2  ;;  %v1206_v63 = vadd.f32 %v1205_v35, %v1204_v46 }
 0x1cd   : > { %v1239_v1 = vcombine.low %v1225_v3, %v1226_v36  ;;  %v1207_v38 = vrot.slane %v1206_v63, 2 }
 0x1cf   : > { %v1208_v40 = vadd.f32 %v1207_v38, %v1206_v63  ;;  %v1261_v0 = vrot.slane %v1239_v1, %v1246_v47 }
 0x1d1   : > { %v1209_v8 = vrot.slane %v1208_v40, 1 }
 0x1d3   : > { %v1210_v25 = vadd.f32 %v1209_v8, %v1208_v40 }
 0x1d5   : > { %v1228_v54 = vadd.f32 %v1969_v49, %v1210_v25 }
 0x1d7   : > { %v1240_v4 = vcombine.low %v1227_v41, %v1228_v54 }
 0x1d9   : > { %v1268_v37 = vrot.slane %v1240_v4, %v1246_v47 }
 0x1db   : > { %v1270_v45 = vcombine.low %v1261_v0, %v1268_v37 }
 0x1dd   : > { %v1284_v44 = vrot.slane %v1270_v45, %v1246_v47 }
 0x1df   : > { %v1285_v24 = vcombine.low %v1277_v9, %v1284_v44 }
 0x1e1   : > { %1287 = vst [vmem:[%s280_s6] sm:$0xff] %v1285_v24 }
 0x1e2 PF: > { %s19_s26 = sadd.s32 1, %s1550_s26  }
 0x1e3   : > { %p16_p4 = scmp.ge.s32.totalorder %s19_s26, 4  }
 0x1e5   :  { %18 = sbr.rel (!%p16_p4) target bundleno = 3 (0x3), region = 78 }

</bundles_post_ra>
